<compile_context>
chip_gen: v6e
topology: v6e:2x2x1
jax: 0.10.0
libtpu: 0.0.40
codegen_flags: <defaults>
</compile_context>

<pallas_src>
import functools

import jax
import jax.numpy as jnp
from jax.experimental import pallas as pl
from jax.experimental.pallas import tpu as pltpu

MIB = 1024 * 1024


def _round_up(x, m):
    return ((x + m - 1) // m) * m


def _cdiv(a, b):
    return -(-a // b)


def _vmem_capacity_bytes():
    try:
        cap = getattr(pltpu.get_tpu_info(), "vmem_capacity_bytes", None)
        if cap:
            return int(cap)
    except Exception:
        pass
    return 64 * MIB  # conservative fallback (v7x per-TensorCore VMEM)


def _head(z, res):
    # sigmoid via tanh: mathematically identical, stays in the EUP slot.
    return jnp.tanh(z) if res else 0.5 * jnp.tanh(0.5 * z) + 0.5


def _mlp_kernel(x_ref, w1_ref, b1_ref, w2_ref, b2_ref, o_ref, *, res):
    # layer1 on the MXU with f32 accumulation; bias + ReLU in f32.
    h = jnp.dot(x_ref[...], w1_ref[...], preferred_element_type=jnp.float32)
    h = jnp.maximum(h + b1_ref[...], 0.0)
    # clf_head: cast back to operand dtype (no-op for f32; bf16 MXU path otherwise).
    z = jnp.dot(h.astype(w2_ref.dtype), w2_ref[...],
                preferred_element_type=jnp.float32) + b2_ref[...]
    o_ref[...] = _head(z, res).astype(o_ref.dtype)


def _mlp_kernel_ksplit(x_ref, w1_ref, b1_ref, w2_ref, b2_ref, o_ref, h_acc, *, res):
    # w1 streamed along D_in (grid axis 1, "arbitrary"); h accumulated in f32 VMEM.
    k = pl.program_id(1)

    @pl.when(k == 0)
    def _():
        h_acc[...] = jnp.zeros_like(h_acc)

    h_acc[...] += jnp.dot(x_ref[...], w1_ref[...],
                          preferred_element_type=jnp.float32)

    @pl.when(k == pl.num_programs(1) - 1)
    def _():
        h = jnp.maximum(h_acc[...] + b1_ref[...], 0.0)
        z = jnp.dot(h.astype(w2_ref.dtype), w2_ref[...],
                    preferred_element_type=jnp.float32) + b2_ref[...]
        o_ref[...] = _head(z, res).astype(o_ref.dtype)


def unimodal_forward(x, w1, b1, w2, b2, *, res=False, block_batch=None,
                     compute_dtype=jnp.float32, force_pallas=False,
                     _force_stream=False):
    """Pallas implementation of UnimodalModel.forward.

    x : (B, D_in)   w1: (D_in, H)   b1: (H,)   w2: (H, O)   b2: (O,)
    (w1 / w2 are the transposed PyTorch layer weights.)
    On v6e/v7x pass compute_dtype=jnp.bfloat16 for ~2x MXU throughput
    (f32 accumulation and f32 bias/activation math are kept either way).
    """
    B, D_in = x.shape
    H = w1.shape[1]
    O = w2.shape[1]
    out_dtype = x.dtype

    # Tiny-problem dispatch: per-grid-step overhead dwarfs compute at toy sizes.
    flops_total = 2 * B * (D_in * H + H * O)
    if not force_pallas and not _force_stream and flops_total < (1 << 22):
        h = jax.nn.relu(x @ w1 + b1)
        z = h @ w2 + b2
        return jnp.tanh(z) if res else jax.nn.sigmoid(z)

    itemsize = jnp.dtype(compute_dtype).itemsize
    out_itemsize = jnp.dtype(out_dtype).itemsize

    # Lane-dense feature padding for weights/bias/output (zeros are exact).
    H_p = _round_up(max(H, 1), 128)
    O_p = _round_up(max(O, 1), 128)
    D_in_lane = _round_up(D_in, 128)   # VMEM lane footprint of an x tile
    D_in_sub = _round_up(D_in, 8)      # VMEM sublane footprint of a w1 block

    # Generation-keyed VMEM budget (v5e/v6e: 128 MiB, v7x: 64 MiB per TC).
    vmem_cap = _vmem_capacity_bytes()
    vmem_budget = int(0.75 * vmem_cap)
    if block_batch is None:
        block_batch = 1024 if vmem_cap >= 96 * MIB else 512

    # ---- Batch tile selection ----
    tb = max(8, _round_up(min(block_batch, B), 8))
    # Keep both TensorCores busy on the "parallel" batch axis for moderate B.
    if B >= 256 and _cdiv(B, tb) < 2:
        tb = _round_up(_cdiv(B, 2), 128)

    # ---- VMEM footprint model: resident-weight path ----
    # Weights/biases single-buffered (pl.Buffered(1)); x/out double-buffered;
    # f32 h and z intermediates included; ~2 MiB compiler scratch headroom.
    w_resident = (D_in_sub * H_p + H_p * O_p) * itemsize + (H_p + O_p) * 4

    def _resident_fp(t):
        return (w_resident
                + 2 * t * D_in_lane * itemsize     # x tile (double-buffered)
                + 2 * t * O_p * out_itemsize       # out tile (double-buffered)
                + t * H_p * 4 + t * O_p * 4        # f32 h / z intermediates
                + 2 * MIB)

    tb_floor = min(tb, 128)
    while tb > tb_floor and _resident_fp(tb) > vmem_budget:
        tb = max(tb_floor, _round_up(tb // 2, 8))
    fp_resident = _resident_fp(tb)

    resident = pl.Buffered(1)  # constant index_map -> DMA once, no second buffer

    if fp_resident <= vmem_budget and not _force_stream:
        # ---------- Resident-weight path (x is NOT padded/copied) ----------
        xc = x if x.dtype == compute_dtype else x.astype(compute_dtype)
        w1c = jnp.pad(w1.astype(compute_dtype), ((0, 0), (0, H_p - H)))
        w2c = jnp.pad(w2.astype(compute_dtype), ((0, H_p - H), (0, O_p - O)))
        b1p = jnp.pad(b1.astype(jnp.float32), (0, H_p - H)).reshape(1, H_p)
        b2p = jnp.pad(b2.astype(jnp.float32), (0, O_p - O)).reshape(1, O_p)

        grid = (_cdiv(B, tb),)
        vmem_limit = int(min(max(int(fp_resident * 1.25), 32 * MIB),
                             int(0.85 * vmem_cap)))
        cost = pl.CostEstimate(
            flops=2 * B * (D_in * H_p + H_p * O_p),
            transcendentals=B * O_p,
            bytes_accessed=(xc.size * itemsize + w1c.size * itemsize
                            + w2c.size * itemsize + b1p.size * 4 + b2p.size * 4
                            + B * O_p * out_itemsize),
        )

        out_padded = pl.pallas_call(
            functools.partial(_mlp_kernel, res=res),
            out_shape=jax.ShapeDtypeStruct((B, O_p), out_dtype),
            grid_spec=pltpu.PrefetchScalarGridSpec(
                num_scalar_prefetch=0,
                grid=grid,
                in_specs=[
                    pl.BlockSpec((tb, D_in), lambda i: (i, 0)),            # x tile
                    pl.BlockSpec((D_in, H_p), lambda i: (0, 0),
                                 pipeline_mode=resident),                  # w1
                    pl.BlockSpec((1, H_p), lambda i: (0, 0),
                                 pipeline_mode=resident),                  # b1
                    pl.BlockSpec((H_p, O_p), lambda i: (0, 0),
                                 pipeline_mode=resident),                  # w2
                    pl.BlockSpec((1, O_p), lambda i: (0, 0),
                                 pipeline_mode=resident),                  # b2
                ],
                out_specs=pl.BlockSpec((tb, O_p), lambda i: (i, 0)),       # lane-dense
            ),
            compiler_params=pltpu.CompilerParams(
                dimension_semantics=("parallel",),
                vmem_limit_bytes=vmem_limit,
            ),
            cost_estimate=cost,
        )(xc, w1c, b1p, w2c, b2p)
        return out_padded[:, :O]

    # ---------- Weight-streaming path: stream w1 over D_in ("K") ----------
    # TODO(synk): also stream w2 over an H axis when H_p*O_p alone exceeds the budget.
    D_in_p = _round_up(D_in, 128)

    def _ksplit_fp(t, tk):
        return (H_p * O_p * itemsize + (H_p + O_p) * 4   # resident w2 + biases
                + 2 * tk * H_p * itemsize                # streamed w1 slab (x2)
                + 2 * t * tk * itemsize                  # x tile (x2)
                + 2 * t * O_p * out_itemsize             # out tile (x2)
                + t * H_p * 4                            # h accumulator scratch
                + t * H_p * 4 + t * O_p * 4              # h / z temporaries
                + 2 * MIB)

    while tb > 128 and _ksplit_fp(tb, 128) > vmem_budget:
        tb = max(128, _round_up(tb // 2, 8))
    tk = 128
    while 2 * tk <= D_in_p and _ksplit_fp(tb, 2 * tk) <= vmem_budget:
        tk *= 2
    tk = min(tk, D_in_p)

    D_in_pad = _round_up(D_in, tk)
    xc = jnp.pad(x.astype(compute_dtype), ((0, 0), (0, D_in_pad - D_in)))
    w1c = jnp.pad(w1.astype(compute_dtype), ((0, D_in_pad - D_in), (0, H_p - H)))
    w2c = jnp.pad(w2.astype(compute_dtype), ((0, H_p - H), (0, O_p - O)))
    b1p = jnp.pad(b1.astype(jnp.float32), (0, H_p - H)).reshape(1, H_p)
    b2p = jnp.pad(b2.astype(jnp.float32), (0, O_p - O)).reshape(1, O_p)

    grid = (_cdiv(B, tb), D_in_pad // tk)
    vmem_limit = int(min(max(int(_ksplit_fp(tb, tk) * 1.25), 32 * MIB),
                         int(0.85 * vmem_cap)))
    cost = pl.CostEstimate(
        flops=2 * B * (D_in_pad * H_p + H_p * O_p),
        transcendentals=B * O_p,
        bytes_accessed=(xc.size * itemsize + w1c.size * itemsize
                        + w2c.size * itemsize + b1p.size * 4 + b2p.size * 4
                        + B * O_p * out_itemsize),
    )

    out_padded = pl.pallas_call(
        functools.partial(_mlp_kernel_ksplit, res=res),
        out_shape=jax.ShapeDtypeStruct((B, O_p), out_dtype),
        grid_spec=pltpu.PrefetchScalarGridSpec(
            num_scalar_prefetch=0,
            grid=grid,
            in_specs=[
                pl.BlockSpec((tb, tk), lambda i, k: (i, k)),               # x tile
                pl.BlockSpec((tk, H_p), lambda i, k: (k, 0)),              # w1 slab
                pl.BlockSpec((1, H_p), lambda i, k: (0, 0),
                             pipeline_mode=resident),                      # b1
                pl.BlockSpec((H_p, O_p), lambda i, k: (0, 0),
                             pipeline_mode=resident),                      # w2
                pl.BlockSpec((1, O_p), lambda i, k: (0, 0),
                             pipeline_mode=resident),                      # b2
            ],
            out_specs=pl.BlockSpec((tb, O_p), lambda i, k: (i, 0)),        # resident acc
            scratch_shapes=[pltpu.VMEM((tb, H_p), jnp.float32)],
        ),
        compiler_params=pltpu.CompilerParams(
            dimension_semantics=("parallel", "arbitrary"),
            vmem_limit_bytes=vmem_limit,
        ),
        cost_estimate=cost,
    )(xc, w1c, b1p, w2c, b2p)
    return out_padded[:, :O]


def _reference(x, w1, b1, w2, b2, res=False):
    h = jax.nn.relu(x @ w1 + b1)
    z = h @ w2 + b2
    return jnp.tanh(z) if res else jax.nn.sigmoid(z)


if __name__ == "__main__":
    # Make XLA's f32 matmuls full-precision so the reference matches the kernel.
    jax.config.update("jax_default_matmul_precision", "highest")

    def make_params(key, D_in, H, O):
        k1, kb1, k2, kb2 = jax.random.split(key, 4)
        bound1 = 1.0 / jnp.sqrt(D_in)
        w1 = jax.random.uniform(k1, (D_in, H), jnp.float32, -bound1, bound1)
        b1 = jax.random.uniform(kb1, (H,), jnp.float32, -bound1, bound1)
        bound2 = 1.0 / jnp.sqrt(H)
        w2 = jax.random.uniform(k2, (H, O), jnp.float32, -bound2, bound2)
        b2 = jax.random.uniform(kb2, (O,), jnp.float32, -bound2, bound2)
        return w1, b1, w2, b2

    key = jax.random.PRNGKey(0)
    # Small shapes implied by the module: batch=8, input_dim=16, hidden=32, out=4.
    B, D_in, H, O = 8, 16, 32, 4
    kx, kp, kextra = jax.random.split(key, 3)
    x = jax.random.normal(kx, (B, D_in), dtype=jnp.float32)
    w1, b1, w2, b2 = make_params(kp, D_in, H, O)

    # sigmoid head (res=False), forcing the Pallas resident path at toy size.
    out = jax.block_until_ready(
        unimodal_forward(x, w1, b1, w2, b2, res=False, force_pallas=True))
    ref = _reference(x, w1, b1, w2, b2, res=False)
    assert out.shape == (B, O)
    assert jnp.allclose(out, ref, atol=1e-5, rtol=1e-5)

    # tanh head (res=True).
    out_res = jax.block_until_ready(
        unimodal_forward(x, w1, b1, w2, b2, res=True, force_pallas=True))
    ref_res = _reference(x, w1, b1, w2, b2, res=True)
    assert jnp.allclose(out_res, ref_res, atol=1e-5, rtol=1e-5)

    # bf16 operand path (f32 MXU accumulation) — looser tolerance.
    out_bf16 = jax.block_until_ready(
        unimodal_forward(x, w1, b1, w2, b2, res=False, force_pallas=True,
                         compute_dtype=jnp.bfloat16))
    assert jnp.allclose(out_bf16, ref, atol=5e-2, rtol=5e-2)

    # Weight-streaming (K-split) path on a ragged / non-128-aligned problem.
    B2, D2, H2, O2 = 200, 300, 100, 5
    kx2, kp2 = jax.random.split(kextra)
    x2 = jax.random.normal(kx2, (B2, D2), dtype=jnp.float32)
    w1b, b1b, w2b, b2b = make_params(kp2, D2, H2, O2)
    out2 = jax.block_until_ready(
        unimodal_forward(x2, w1b, b1b, w2b, b2b, res=False, _force_stream=True))
    ref2 = _reference(x2, w1b, b1b, w2b, b2b, res=False)
    assert out2.shape == (B2, O2)
    assert jnp.allclose(out2, ref2, atol=1e-4, rtol=1e-4)

    # Auto-dispatch (tiny problem -> plain jnp) stays correct.
    out_auto = jax.block_until_ready(unimodal_forward(x, w1, b1, w2, b2, res=False))
    assert jnp.allclose(out_auto, ref, atol=1e-5, rtol=1e-5)

    print("KERNEL_OK")
</pallas_src>

<mosaic_0001>
module attributes {stable_mosaic.version = 11 : i64} {
  func.func @_mlp_kernel(%arg0: i32, %arg1: memref<8x16xf32, #tpu.memory_space<vmem>>, %arg2: memref<16x128xf32, #tpu.memory_space<vmem>>, %arg3: memref<1x128xf32, #tpu.memory_space<vmem>>, %arg4: memref<128x128xf32, #tpu.memory_space<vmem>>, %arg5: memref<1x128xf32, #tpu.memory_space<vmem>>, %arg6: memref<8x128xf32, #tpu.memory_space<vmem>>) attributes {dimension_semantics = [#tpu.dimension_semantics<parallel>], iteration_bounds = array<i64: 1>, scalar_prefetch = 0 : i64, scratch_operands = 0 : i64, tpu.core_type = #tpu.core_type<tc>, window_params = [{transform_indices = @transform_0, window_bounds = array<i64: 8, 16>}, {pipeline_mode = #tpu.pipeline_mode<synchronous>, transform_indices = @transform_1, window_bounds = array<i64: 16, 128>}, {pipeline_mode = #tpu.pipeline_mode<synchronous>, transform_indices = @transform_2, window_bounds = array<i64: 1, 128>}, {pipeline_mode = #tpu.pipeline_mode<synchronous>, transform_indices = @transform_3, window_bounds = array<i64: 128, 128>}, {pipeline_mode = #tpu.pipeline_mode<synchronous>, transform_indices = @transform_4, window_bounds = array<i64: 1, 128>}, {transform_indices = @transform_5, window_bounds = array<i64: 8, 128>}]} {
    %c0 = arith.constant 0 : index
    %c0_0 = arith.constant 0 : index
    %0 = vector.load %arg1[%c0, %c0_0] : memref<8x16xf32, #tpu.memory_space<vmem>>, vector<8x16xf32>
    %c0_1 = arith.constant 0 : index
    %c0_2 = arith.constant 0 : index
    %1 = vector.load %arg2[%c0_1, %c0_2] : memref<16x128xf32, #tpu.memory_space<vmem>>, vector<16x128xf32>
    %cst = arith.constant dense<0.000000e+00> : vector<8x128xf32>
    %2 = tpu.matmul %0, %1, %cst {dimension_numbers = #tpu.dot_dimension_numbers<[1], [0], [0], [1], [0, 0, 1, 1], [], []>, precision = #tpu.contract_precision<fp32>} : vector<8x16xf32>, vector<16x128xf32>, vector<8x128xf32> -> vector<8x128xf32>
    %c0_3 = arith.constant 0 : index
    %c0_4 = arith.constant 0 : index
    %3 = vector.load %arg3[%c0_3, %c0_4] : memref<1x128xf32, #tpu.memory_space<vmem>>, vector<1x128xf32>
    %4 = vector.broadcast %3 : vector<1x128xf32> to vector<8x128xf32>
    %5 = arith.addf %2, %4 : vector<8x128xf32>
    %cst_5 = arith.constant 0.000000e+00 : f32
    %6 = vector.broadcast %cst_5 : f32 to vector<8x128xf32>
    %7 = arith.maximumf %5, %6 : vector<8x128xf32>
    %c0_6 = arith.constant 0 : index
    %c0_7 = arith.constant 0 : index
    %8 = vector.load %arg4[%c0_6, %c0_7] : memref<128x128xf32, #tpu.memory_space<vmem>>, vector<128x128xf32>
    %cst_8 = arith.constant dense<0.000000e+00> : vector<8x128xf32>
    %9 = tpu.matmul %7, %8, %cst_8 {dimension_numbers = #tpu.dot_dimension_numbers<[1], [0], [0], [1], [0, 0, 1, 1], [], []>, precision = #tpu.contract_precision<fp32>} : vector<8x128xf32>, vector<128x128xf32>, vector<8x128xf32> -> vector<8x128xf32>
    %c0_9 = arith.constant 0 : index
    %c0_10 = arith.constant 0 : index
    %10 = vector.load %arg5[%c0_9, %c0_10] : memref<1x128xf32, #tpu.memory_space<vmem>>, vector<1x128xf32>
    %11 = vector.broadcast %10 : vector<1x128xf32> to vector<8x128xf32>
    %12 = arith.addf %9, %11 : vector<8x128xf32>
    %cst_11 = arith.constant 5.000000e-01 : f32
    %13 = vector.broadcast %cst_11 : f32 to vector<8x128xf32>
    %14 = arith.mulf %13, %12 : vector<8x128xf32>
    %15 = math.tanh %14 : vector<8x128xf32>
    %cst_12 = arith.constant 5.000000e-01 : f32
    %16 = vector.broadcast %cst_12 : f32 to vector<8x128xf32>
    %17 = arith.mulf %16, %15 : vector<8x128xf32>
    %cst_13 = arith.constant 5.000000e-01 : f32
    %18 = vector.broadcast %cst_13 : f32 to vector<8x128xf32>
    %19 = arith.addf %17, %18 : vector<8x128xf32>
    %c0_14 = arith.constant 0 : index
    %c0_15 = arith.constant 0 : index
    %20 = vector.load %arg6[%c0_14, %c0_15] : memref<8x128xf32, #tpu.memory_space<vmem>>, vector<8x128xf32>
    tpu.vector_store %arg6[%c0_14, %c0_15], %19 {strides = array<i32>} : memref<8x128xf32, #tpu.memory_space<vmem>>, vector<8x128xf32>,
    return
  }
  func.func @transform_0(%arg0: i32) -> (i32, i32) {
    %c0_i32 = arith.constant 0 : i32
    %c0_i32_0 = arith.constant 0 : i32
    return %arg0, %c0_i32 : i32, i32
  }
  func.func @transform_1(%arg0: i32) -> (i32, i32) {
    %c0_i32 = arith.constant 0 : i32
    %c0_i32_0 = arith.constant 0 : i32
    %c0_i32_1 = arith.constant 0 : i32
    return %c0_i32, %c0_i32_0 : i32, i32
  }
  func.func @transform_2(%arg0: i32) -> (i32, i32) {
    %c0_i32 = arith.constant 0 : i32
    %c0_i32_0 = arith.constant 0 : i32
    %c0_i32_1 = arith.constant 0 : i32
    return %c0_i32, %c0_i32_0 : i32, i32
  }
  func.func @transform_3(%arg0: i32) -> (i32, i32) {
    %c0_i32 = arith.constant 0 : i32
    %c0_i32_0 = arith.constant 0 : i32
    %c0_i32_1 = arith.constant 0 : i32
    return %c0_i32, %c0_i32_0 : i32, i32
  }
  func.func @transform_4(%arg0: i32) -> (i32, i32) {
    %c0_i32 = arith.constant 0 : i32
    %c0_i32_0 = arith.constant 0 : i32
    %c0_i32_1 = arith.constant 0 : i32
    return %c0_i32, %c0_i32_0 : i32, i32
  }
  func.func @transform_5(%arg0: i32) -> (i32, i32) {
    %c0_i32 = arith.constant 0 : i32
    %c0_i32_0 = arith.constant 0 : i32
    return %arg0, %c0_i32 : i32, i32
  }
}

</mosaic_0001>

<bundles_post_ra>
// kernel: tpu_custom_call.1
= control target key start
LH: loop header
LB: loop body
LE: loop exit
PB: predicated region body
PF: predicated region fallthrough
CT: control target
= control target key end

     0   :  { %10 = vsyncpa [#allocation3], 0  ;;  %s2146_s0 = inlined_call_operand.hbm [shape: f32[8,16], index: 0, kind: input, shape index: {}]   ;;  %s2147_s1 = inlined_call_operand.hbm [shape: f32[16,128], index: 1, kind: input, shape index: {}]   ;;  %s2148_s2 = inlined_call_operand.vmem [shape: f32[1,128], index: 2, kind: input, shape index: {}]   ;;  %s2149_s3 = inlined_call_operand.hbm [shape: f32[128,128], index: 3, kind: input, shape index: {}]   ;;  %s2150_s4 = inlined_call_operand.vmem [shape: f32[1,128], index: 4, kind: input, shape index: {}]   ;;  %s2151_s5 = inlined_call_operand.hbm [shape: f32[8,128], index: 5, kind: output, shape index: {}]  }
   0x1   :  { %11 = vsyncpa [#allocation6], 0 }
   0x2   :  { %12 = vsyncpa [#allocation4], 0  ;;  %s1689_s18 = smov [#allocation5]  }
   0x3   :  { %s28_s19 = sshll.u32 %s1689_s18, 4  ;;  %s29_s19 = int_to_ptr.vmem [resolvable:$true] %s28_s19 }
   0x4   :  { %s1611_s20 = scalar_lea.vmem %s29_s19, 256  ;;  %p1616_p1 = scmp.lt.s32.totalorder %s29_s19, %s29_s19 }
   0x5   :  { %p1612_p0 = scmp.ne.s32.totalorder %s29_s19, %s1611_s20  ;;  %p1617_p2 = scmp.lt.s32.totalorder %s1611_s20, %s1611_s20 }
   0x7   :  { %p1618_p3 = por %p1617_p2, %p1616_p1 }
   0x9   :  { %p1619_p4 = pnand %p1618_p3, %p1612_p0 }
   0xb   :  { %1622 = shalt.err (!%p1619_p4)
}
   0xc   :  { %s1690_s21 = smov 128   ;;  %s1691_s22 = smov 8  }
   0xd   :  { %34 = dma.hbm_to_vmem [thread:$0]  %s2147_s1, 256, %s29_s19, [#allocation6], %s1690_s21, %s1690_s21, %s1691_s22  }
   0xe   :  { %s1692_s25 = smov [#allocation2]   ;;  %s1693_s27 = smov [#allocation7]  }
   0xf   :  { %s19_s26 = sshll.u32 %s1692_s25, 4  ;;  %s42_s28 = sshll.u32 %s1693_s27, 4  ;;  %s20_s26 = int_to_ptr.vmem [resolvable:$true] %s19_s26  ;;  %s43_s28 = int_to_ptr.vmem [resolvable:$true] %s42_s28 }
  0x10   :  { %s1631_s29 = scalar_lea.vmem %s20_s26, 128  ;;  %p1636_p6 = scmp.lt.s32.totalorder %s20_s26, %s20_s26 }
  0x11   :  { %p1632_p5 = scmp.ne.s32.totalorder %s20_s26, %s1631_s29  ;;  %p1637_p7 = scmp.lt.s32.totalorder %s1631_s29, %s1631_s29 }
  0x13   :  { %p1638_p8 = por %p1637_p7, %p1636_p6 }
  0x15   :  { %p1639_p9 = pnand %p1638_p8, %p1632_p5 }
  0x17   :  { %1642 = shalt.err (!%p1639_p9)
}
  0x18   :  { %22 = dma.hbm_to_vmem [thread:$0]  %s2146_s0, 128, %s20_s26, [#allocation3]  }
  0x19   :  { %s1651_s7 = scalar_lea.vmem %s43_s28, 2048  ;;  %p1656_p11 = scmp.lt.s32.totalorder %s43_s28, %s43_s28 }
  0x1a   :  { %p1652_p10 = scmp.ne.s32.totalorder %s43_s28, %s1651_s7  ;;  %p1657_p12 = scmp.lt.s32.totalorder %s1651_s7, %s1651_s7 }
  0x1c   :  { %p1658_p13 = por %p1657_p12, %p1656_p11 }
  0x1e   :  { %p1659_p0 = pnand %p1658_p13, %p1652_p10 }
  0x20   :  { %1662 = shalt.err (!%p1659_p0)
}
  0x21   :  { %48 = dma.hbm_to_vmem [thread:$0]  %s2149_s3, 2048, %s43_s28, [#allocation6], %s1690_s21, %s1690_s21, %s1691_s22  }
  0x22   :  { %1683 = dma.done.wait [#allocation3], 128  }
  0x23   :  { %1684 = vsyncadd [#allocation3], 4294967168 }
  0x24   :  { %1685 = dma.done.wait [#allocation6], 2304  }
  0x25   :  { %1686 = vsyncadd [#allocation6], 4294964992  ;;  %v1694_v0 = vmov 0.0   ;;  %vm1695_vm0 = vmmov 0   ;;  %vm70_vm1 = vcmask 130048   ;;  %v62_v1 = vld [vmem:[#allocation5 + $0x8] sm:$0xff] }
  0x26   :  { %1341 = vmatprep.subr.mxu0 %v1694_v0  ;;  %1348 = vmatprep.subr.mxu1 %v1694_v0  ;;  %v61_v2 = vld [vmem:[#allocation5] sm:$0xff]  ;;  %v60_v3 = vld [vmem:[#allocation2] sm:$0xff]  ;;  %v1742_v4 = vand.u32 4294901760, %v62_v1  ;;  %v549_v10 = vld [vmem:[#allocation7 + $0x78] sm:$0xff]  ;;  %s1696_s10 = smov [#allocation8]  }
  0x27   :  { %1345 = vmatprep.mubr.msk.f32.mxu0 %vm1695_vm0, %v1694_v0  ;;  %1352 = vmatprep.mubr.msk.f32.mxu1 %vm1695_vm0, %v1694_v0  ;;  %v1744_v5 = vand.u32 4294901760, %v61_v2  ;;  %v72_v6 = vsel %vm70_vm1, %v60_v3, 0  ;;  %v548_v14 = vld [vmem:[#allocation7 + $0x70] sm:$0xff]  ;;  %v1755_v16 = vand.u32 4294901760, %v549_v10  ;;  %v547_v19 = vld [vmem:[#allocation7 + $0x68] sm:$0xff]  ;;  %v546_v24 = vld [vmem:[#allocation7 + $0x60] sm:$0xff] }
  0x28   :  { %v1746_v7 = vand.u32 4294901760, %v72_v6  ;;  %1342 = vmatpush3.msra.mxu0 %v1742_v4  ;;  %v181_v8 = vsub.f32 %v62_v1, %v1742_v4  ;;  %v1757_v21 = vand.u32 4294901760, %v548_v14  ;;  %v1762_v27 = vand.u32 4294901760, %v547_v19  ;;  %v545_v28 = vld [vmem:[#allocation7 + $0x58] sm:$0xff]  ;;  %v544_v31 = vld [vmem:[#allocation7 + $0x50] sm:$0xff]  ;;  %v543_v35 = vld [vmem:[#allocation7 + $0x48] sm:$0xff] }
  0x29   :  { %v188_v9 = vsub.f32 %v61_v2, %v1744_v5  ;;  %1343 = vmatprep.subr.mxu0 %v1694_v0  ;;  %v1760_v26 = vsub.f32 %v549_v10, %v1755_v16  ;;  %v1768_v30 = vand.u32 4294901760, %v546_v24  ;;  %v1776_v34 = vand.u32 4294901760, %v545_v28  ;;  %v542_v39 = vld [vmem:[#allocation7 + $0x40] sm:$0xff]  ;;  %v539_v10 = vld [vmem:[#allocation7 + $0x28] sm:$0xff]  ;;  %s1209_s11 = sshll.u32 %s1696_s10, 4  ;;  %s1210_s11 = int_to_ptr.vmem [resolvable:$true] %s1209_s11 }
  0x2a   :  { %v142_v11 = vsub.f32 %v72_v6, %v1746_v7  ;;  %1344 = vmatpush3.msra.mxu0 %v1744_v5  ;;  %v182_v12 = vand.u32 4294901760, %v181_v8  ;;  %v1766_v29 = vsub.f32 %v548_v14, %v1757_v21  ;;  %v1774_v33 = vsub.f32 %v547_v19, %v1762_v27  ;;  %v538_v14 = vld [vmem:[#allocation7 + $0x20] sm:$0xff]  ;;  %p1668_p2 = scmp.lt.s32.totalorder %s1210_s11, %s1210_s11 }
  0x2b   :  { %v189_v13 = vand.u32 4294901760, %v188_v9  ;;  %1355 = vmatprep.subr.mxu0 %v1694_v0  ;;  %v651_v32 = vand.u32 4294901760, %v1760_v26  ;;  %v1784_v37 = vsub.f32 %v546_v24, %v1768_v30  ;;  %v1786_v38 = vand.u32 4294901760, %v544_v31 }
  0x2c   :  { %v143_v15 = vand.u32 4294901760, %v142_v11  ;;  %v183_v17 = vsub.f32 %v181_v8, %v182_v12  ;;  %v658_v36 = vand.u32 4294901760, %v1766_v29  ;;  %v665_v41 = vand.u32 4294901760, %v1774_v33 }
  0x2d   :  { %v190_v18 = vsub.f32 %v188_v9, %v189_v13  ;;  %v652_v40 = vsub.f32 %v1760_v26, %v651_v32  ;;  %v1796_v42 = vsub.f32 %v545_v28, %v1776_v34  ;;  %v1798_v43 = vand.u32 4294901760, %v543_v35 }
  0x2e   :  { %v144_v20 = vsub.f32 %v142_v11, %v143_v15  ;;  %v184_v22 = vand.u32 4294901760, %v183_v17  ;;  %v659_v44 = vsub.f32 %v1766_v29, %v658_v36  ;;  %v672_v45 = vand.u32 4294901760, %v1784_v37 }
  0x2f   :  { %v191_v23 = vand.u32 4294901760, %v190_v18  ;;  %v1808_v46 = vsub.f32 %v544_v31, %v1786_v38  ;;  %v1810_v47 = vand.u32 4294901760, %v542_v39  ;;  %v653_v48 = vand.u32 4294901760, %v652_v40  ;;  %v536_v31 = vld [vmem:[#allocation7 + $0x10] sm:$0xff] }
  0x30   :  { %v145_v25 = vand.u32 4294901760, %v144_v20  ;;  %1349 = vmatpush3.msra.mxu1 %v184_v22  ;;  %v666_v49 = vsub.f32 %v1774_v33, %v665_v41  ;;  %v679_v50 = vand.u32 4294901760, %v1796_v42  ;;  %v1821_v51 = vsub.f32 %v543_v35, %v1798_v43  ;;  %v537_v20 = vld [vmem:[#allocation7 + $0x18] sm:$0xff] }
  0x31   :  { %1350 = vmatprep.subr.mxu1 %v1694_v0  ;;  %v660_v52 = vand.u32 4294901760, %v659_v44  ;;  %v673_v53 = vsub.f32 %v1784_v37, %v672_v45  ;;  %v686_v54 = vand.u32 4294901760, %v1808_v46  ;;  %v1833_v55 = vsub.f32 %v542_v39, %v1810_v47 }
  0x32   :  { %1346 = vmatmul.mubr.f32.vlgmr.msra.gmra.mxu0 %v145_v25  ;;  %1351 = vmatpush3.msra.mxu1 %v191_v23  ;;  %v667_v56 = vand.u32 4294901760, %v666_v49  ;;  %v680_v57 = vsub.f32 %v1796_v42, %v679_v50  ;;  %v693_v58 = vand.u32 4294901760, %v1821_v51  ;;  %v1904_v19 = vand.u32 4294901760, %v538_v14  ;;  %v535_v49 = vld [vmem:[#allocation7 + $0x8] sm:$0xff] }
  0x33   :  { %1356 = vmatpush3.msra.mxu0 %v181_v8  ;;  %1353 = vmatmul.mubr.f32.vlgmr.msra.gmra.mxu1 %v1746_v7  ;;  %v674_v59 = vand.u32 4294901760, %v673_v53  ;;  %v687_v60 = vsub.f32 %v1808_v46, %v686_v54  ;;  %v700_v61 = vand.u32 4294901760, %v1833_v55  ;;  %v1916_v28 = vand.u32 4294901760, %v537_v20 }
  0x34   :  { %1357 = vmatprep.subr.mxu0 %v1694_v0  ;;  %1362 = vmatprep.subr.mxu1 %v1694_v0  ;;  %v681_v62 = vand.u32 4294901760, %v680_v57  ;;  %v694_v63 = vsub.f32 %v1821_v51, %v693_v58  ;;  %v1913_v25 = vsub.f32 %v538_v14, %v1904_v19  ;;  %v1923_v44 = vand.u32 4294901760, %v536_v31 }
  0x35   :  { %1358 = vmatpush3.msra.mxu0 %v188_v9  ;;  %1359 = vmatprep.mubr.msk.f32.mxu0 %vm1695_vm0, %v1694_v0  ;;  %v688_v1 = vand.u32 4294901760, %v687_v60  ;;  %v701_v2 = vsub.f32 %v1833_v55, %v700_v61  ;;  %v1936_v57 = vand.u32 4294901760, %v535_v49  ;;  %v534_v60 = vld [vmem:[#allocation7] sm:$0xff] }
  0x36   :  { %1363 = vmatpush3.msra.mxu1 %v1742_v4  ;;  %1360 = vmatmul.mubr.f32.vlgmr.msra.gmra.mxu0 %v142_v11  ;;  %v695_v3 = vand.u32 4294901760, %v694_v63  ;;  %v2156_v40 = vand.u32 4294901760, %v1913_v25 }
  0x37   :  { %1364 = vmatprep.subr.mxu1 %v1694_v0  ;;  %1369 = vmatprep.subr.mxu0 %v1694_v0 }
  0x38   :  { %1365 = vmatpush3.msra.mxu1 %v1744_v5  ;;  %1366 = vmatprep.mubr.msk.f32.mxu1 %vm1695_vm0, %v1694_v0  ;;  %v729_v53 = vsub.f32 %v1913_v25, %v2156_v40 }
  0x39   :  { %1370 = vmatpush3.msra.mxu0 %v182_v12  ;;  %1367 = vmatmul.mubr.f32.vlgmr.msra.gmra.mxu1 %v143_v15 }
  0x3a   :  { %1371 = vmatprep.subr.mxu0 %v1694_v0  ;;  %1376 = vmatprep.subr.mxu1 %v1694_v0 }
  0x3b   :  { %1372 = vmatpush3.msra.mxu0 %v189_v13  ;;  %1373 = vmatprep.mubr.msk.f32.mxu0 %vm1695_vm0, %v1694_v0  ;;  %v1893_v13 = vand.u32 4294901760, %v539_v10 }
  0x3c   :  { %1377 = vmatpush3.msra.mxu1 %v1742_v4  ;;  %1374 = vmatmul.mubr.f32.vlgmr.msra.gmra.mxu0 %v1746_v7  ;;  %v702_v4 = vand.u32 4294901760, %v701_v2  ;;  %v1946_v2 = vand.u32 4294901760, %v534_v60 }
  0x3d   :  { %1378 = vmatprep.subr.mxu1 %v1694_v0  ;;  %1380 = vmatprep.mubr.msk.f32.mxu1 %vm1695_vm0, %v1694_v0  ;;  %v1902_v18 = vsub.f32 %v539_v10, %v1893_v13 }
  0x3e   :  { %1379 = vmatpush3.msra.mxu1 %v1744_v5  ;;  %1383 = vmatprep.subr.mxu0 %v1694_v0  ;;  %v541_v5 = vld [vmem:[#allocation7 + $0x38] sm:$0xff] }
  0x3f   :  { %1381 = vmatmul.mubr.f32.vlgmr.msra.gmra.mxu1 %v1746_v7  ;;  %1418 = vmatprep.subr.mxu1 %v1694_v0  ;;  %v1880_v6 = vand.u32 4294901760, %v541_v5  ;;  %v540_v7 = vld [vmem:[#allocation7 + $0x30] sm:$0xff]  ;;  %v2157_v24 = vand.u32 4294901760, %v1902_v18 }
  0x40   :  { %1419 = vmatpush3.msra.mxu1 %v653_v48  ;;  %1384 = vmatpush3.msra.mxu0 %v1755_v16  ;;  %v1885_v9 = vand.u32 4294901760, %v540_v7  ;;  %v1927_v48 = vsub.f32 %v537_v20, %v1916_v28 }
  0x41   :  { %1420 = vmatprep.subr.mxu1 %v1694_v0  ;;  %1385 = vmatprep.subr.mxu0 %v1694_v0  ;;  %v1883_v8 = vsub.f32 %v541_v5, %v1880_v6  ;;  %v722_v39 = vsub.f32 %v1902_v18, %v2157_v24 }
  0x42   :  { %1421 = vmatpush3.msra.mxu1 %v660_v52  ;;  %1386 = vmatpush3.msra.mxu0 %v1757_v21  ;;  %v1891_v12 = vsub.f32 %v540_v7, %v1885_v9  ;;  %v1959_v7 = vsub.f32 %v534_v60, %v1946_v2 }
  0x43   :  { %1422 = vmatprep.subr.mxu1 %v1694_v0  ;;  %1387 = vmatprep.subr.mxu0 %v1694_v0  ;;  %v707_v11 = vand.u32 4294901760, %v1883_v8  ;;  %v723_v52 = vand.u32 4294901760, %v722_v39 }
  0x44   :  { %1423 = vmatpush3.msra.mxu1 %v667_v56  ;;  %1388 = vmatpush3.msra.mxu0 %v1762_v27  ;;  %v714_v17 = vand.u32 4294901760, %v1891_v12  ;;  %v1934_v56 = vsub.f32 %v536_v31, %v1923_v44  ;;  %v2152_v20 = vand.u32 4294901760, %v1959_v7 }
  0x45   :  { %1424 = vmatprep.subr.mxu1 %v1694_v0  ;;  %1389 = vmatprep.subr.mxu0 %v1694_v0  ;;  %v708_v15 = vsub.f32 %v1883_v8, %v707_v11 }
  0x46   :  { %1425 = vmatpush3.msra.mxu1 %v674_v59  ;;  %1390 = vmatpush3.msra.mxu0 %v1768_v30  ;;  %v715_v23 = vsub.f32 %v1891_v12, %v714_v17  ;;  %v2155_v59 = vand.u32 4294901760, %v1927_v48  ;;  %v2154_v63 = vand.u32 4294901760, %v1934_v56 }
  0x47   :  { %1426 = vmatprep.subr.mxu1 %v1694_v0  ;;  %1391 = vmatprep.subr.mxu0 %v1694_v0  ;;  %v709_v22 = vand.u32 4294901760, %v708_v15 }
  0x48   :  { %1427 = vmatpush3.msra.mxu1 %v681_v62  ;;  %1392 = vmatpush3.msra.mxu0 %v1776_v34  ;;  %v716_v35 = vand.u32 4294901760, %v715_v23  ;;  %v730_v62 = vand.u32 4294901760, %v729_v53  ;;  %v757_v23 = vsub.f32 %v1959_v7, %v2152_v20 }
  0x49   :  { %1428 = vmatprep.subr.mxu1 %v1694_v0  ;;  %1393 = vmatprep.subr.mxu0 %v1694_v0 }
  0x4a   :  { %1429 = vmatpush3.msra.mxu1 %v688_v1  ;;  %1394 = vmatpush3.msra.mxu0 %v1786_v38  ;;  %v1944_v1 = vsub.f32 %v535_v49, %v1936_v57  ;;  %v758_v31 = vand.u32 4294901760, %v757_v23 }
  0x4b   :  { %1430 = vmatprep.subr.mxu1 %v1694_v0  ;;  %1395 = vmatprep.subr.mxu0 %v1694_v0 }
  0x4c   :  { %1431 = vmatpush3.msra.mxu1 %v695_v3  ;;  %1396 = vmatpush3.msra.mxu0 %v1798_v43  ;;  %v736_v3 = vsub.f32 %v1927_v48, %v2155_v59  ;;  %v2153_v5 = vand.u32 4294901760, %v1944_v1 }
  0x4d   :  { %1432 = vmatprep.subr.mxu1 %v1694_v0  ;;  %1397 = vmatprep.subr.mxu0 %v1694_v0 }
  0x4e   :  { %1433 = vmatpush3.msra.mxu1 %v702_v4  ;;  %1398 = vmatpush3.msra.mxu0 %v1810_v47  ;;  %v743_v4 = vsub.f32 %v1934_v56, %v2154_v63  ;;  %v737_v10 = vand.u32 4294901760, %v736_v3  ;;  %v750_v15 = vsub.f32 %v1944_v1, %v2153_v5 }
  0x4f   :  { %1434 = vmatprep.subr.mxu1 %v1694_v0  ;;  %1399 = vmatprep.subr.mxu0 %v1694_v0 }
  0x50   :  { %1450 = vmatprep.mubr.msk.f32.mxu1 %vm1695_vm0, %v1694_v0  ;;  %1415 = vmatprep.mubr.msk.f32.mxu0 %vm1695_vm0, %v1694_v0  ;;  %v744_v14 = vand.u32 4294901760, %v743_v4 }
  0x51   :  { %1400 = vmatpush3.msra.mxu0 %v1880_v6  ;;  %1435 = vmatpush3.msra.mxu1 %v709_v22  ;;  %v751_v22 = vand.u32 4294901760, %v750_v15 }
  0x52   :  { %1401 = vmatprep.subr.mxu0 %v1694_v0  ;;  %1436 = vmatprep.subr.mxu1 %v1694_v0 }
  0x53   :  { %1402 = vmatpush3.msra.mxu0 %v1885_v9  ;;  %1437 = vmatpush3.msra.mxu1 %v716_v35  ;;  %v1219_v35 = vld [vmem:[%s2148_s2] ss:$0 sm:$0xff] }
  0x54   :  { %1403 = vmatprep.subr.mxu0 %v1694_v0  ;;  %1438 = vmatprep.subr.mxu1 %v1694_v0 }
  0x55   :  { %1404 = vmatpush3.msra.mxu0 %v1893_v13  ;;  %1439 = vmatpush3.msra.mxu1 %v723_v52 }
  0x56   :  { %1405 = vmatprep.subr.mxu0 %v1694_v0  ;;  %1440 = vmatprep.subr.mxu1 %v1694_v0 }
  0x57   :  { %1406 = vmatpush3.msra.mxu0 %v1904_v19  ;;  %1441 = vmatpush3.msra.mxu1 %v730_v62 }
  0x58   :  { %1407 = vmatprep.subr.mxu0 %v1694_v0  ;;  %1442 = vmatprep.subr.mxu1 %v1694_v0 }
  0x59   :  { %1408 = vmatpush3.msra.mxu0 %v1916_v28  ;;  %1443 = vmatpush3.msra.mxu1 %v737_v10 }
  0x5a   :  { %1409 = vmatprep.subr.mxu0 %v1694_v0  ;;  %1444 = vmatprep.subr.mxu1 %v1694_v0 }
  0x5b   :  { %1410 = vmatpush3.msra.mxu0 %v1923_v44  ;;  %1445 = vmatpush3.msra.mxu1 %v744_v14 }
  0x5c   :  { %1411 = vmatprep.subr.mxu0 %v1694_v0  ;;  %1446 = vmatprep.subr.mxu1 %v1694_v0 }
  0x5d   :  { %1412 = vmatpush3.msra.mxu0 %v1936_v57  ;;  %1447 = vmatpush3.msra.mxu1 %v751_v22 }
  0x5e   :  { %1413 = vmatprep.subr.mxu0 %v1694_v0  ;;  %1448 = vmatprep.subr.mxu1 %v1694_v0 }
  0x5f   :  { %1414 = vmatpush3.msra.mxu0 %v1946_v2  ;;  %1449 = vmatpush3.msra.mxu1 %v758_v31 }
  0x60   :  { %1453 = vmatprep.subr.mxu0 %v1694_v0  ;;  %1488 = vmatprep.subr.mxu1 %v1694_v0 }
  0xf2   :  { %v147_v39 = vpop.f32.mrf.mxu0 }
  0xf3   :  { %v148_v49 = vadd.f32 %v1219_v35, %v147_v39  ;;  %v228_v53 = vpop.f32.mrf.mxu1 }
  0xf4   :  { %v1347_v52 = vpop.f32.mrf.mxu0 }
  0xf5   :  { %v229_v60 = vadd.f32 %v228_v53, %v148_v49  ;;  %v1354_v62 = vpop.f32.mrf.mxu1 }
  0xf6   :  { %v304_v3 = vpop.f32.mrf.mxu0 }
  0xf7   :  { %v305_v4 = vadd.f32 %v304_v3, %v229_v60 }
  0xf8   :  { %v1361_v10 = vpop.f32.mrf.mxu0 }
  0xf9   :  { %v379_v14 = vpop.f32.mrf.mxu1 }
  0xfa   :  { %v380_v15 = vadd.f32 %v379_v14, %v305_v4 }
  0xfb   :  { %v1368_v22 = vpop.f32.mrf.mxu1 }
  0xfc   :  { %v456_v23 = vpop.f32.mrf.mxu0 }
  0xfd   :  { %v457_v31 = vadd.f32 %v456_v23, %v380_v15 }
  0xfe   :  { %v1375_v20 = vpop.f32.mrf.mxu0 }
  0xff   :  { %v529_v5 = vpop.f32.mrf.mxu1 }
 0x100   :  { %v530_v63 = vadd.f32 %v529_v5, %v457_v31 }
 0x101   :  { %v1382_v59 = vpop.f32.mrf.mxu1 }
 0x102   :  { %v533_v40 = vmax.f32 %v530_v63, 0.0 }
 0x104   :  { %v1979_v24 = vand.u32 4294901760, %v533_v40 }
 0x106   :  { %v1982_v35 = vsub.f32 %v533_v40, %v1979_v24  ;;  %1451 = vmatmul.mubr.f32.vlgmr.msra.gmra.mxu1 %v1979_v24 }
 0x107   :  { %1489 = vmatpush3.msra.mxu1 %v1755_v16  ;;  %1520 = vmatprep.mubr.msk.f32.mxu1 %vm1695_vm0, %v1694_v0 }
 0x108   :  { %v640_v39 = vand.u32 4294901760, %v1982_v35  ;;  %1490 = vmatprep.subr.mxu1 %v1694_v0 }
 0x109   :  { %1491 = vmatpush3.msra.mxu1 %v1757_v21 }
 0x10a   :  { %v641_v59 = vsub.f32 %v1982_v35, %v640_v39  ;;  %1492 = vmatprep.subr.mxu1 %v1694_v0 }
 0x10b   :  { %1493 = vmatpush3.msra.mxu1 %v1762_v27 }
 0x10c   :  { %1494 = vmatprep.subr.mxu1 %v1694_v0  ;;  %v642_v40 = vand.u32 4294901760, %v641_v59 }
 0x10d   :  { %1495 = vmatpush3.msra.mxu1 %v1768_v30 }
 0x10e   :  { %1496 = vmatprep.subr.mxu1 %v1694_v0  ;;  %1416 = vmatmul.mubr.f32.vlgmr.msra.gmra.mxu0 %v642_v40 }
 0x10f   :  { %1454 = vmatpush3.msra.mxu0 %v1760_v26  ;;  %1497 = vmatpush3.msra.mxu1 %v1776_v34  ;;  %v2160_v26 = vand.u32 4294901760, %v1927_v48 }
 0x110   :  { %1455 = vmatprep.subr.mxu0 %v1694_v0  ;;  %1498 = vmatprep.subr.mxu1 %v1694_v0 }
 0x111   :  { %1456 = vmatpush3.msra.mxu0 %v1766_v29  ;;  %1499 = vmatpush3.msra.mxu1 %v1786_v38  ;;  %v2162_v29 = vand.u32 4294901760, %v1944_v1 }
 0x112   :  { %1457 = vmatprep.subr.mxu0 %v1694_v0  ;;  %1500 = vmatprep.subr.mxu1 %v1694_v0 }
 0x113   :  { %1458 = vmatpush3.msra.mxu0 %v1774_v33  ;;  %1501 = vmatpush3.msra.mxu1 %v1798_v43 }
 0x114   :  { %1459 = vmatprep.subr.mxu0 %v1694_v0  ;;  %1502 = vmatprep.subr.mxu1 %v1694_v0 }
 0x115   :  { %1460 = vmatpush3.msra.mxu0 %v1784_v37  ;;  %1503 = vmatpush3.msra.mxu1 %v1810_v47 }
 0x116   :  { %1461 = vmatprep.subr.mxu0 %v1694_v0  ;;  %1504 = vmatprep.subr.mxu1 %v1694_v0 }
 0x117   :  { %1462 = vmatpush3.msra.mxu0 %v1796_v42  ;;  %1505 = vmatpush3.msra.mxu1 %v1880_v6 }
 0x118   :  { %1463 = vmatprep.subr.mxu0 %v1694_v0  ;;  %1506 = vmatprep.subr.mxu1 %v1694_v0 }
 0x119   :  { %1464 = vmatpush3.msra.mxu0 %v1808_v46  ;;  %1507 = vmatpush3.msra.mxu1 %v1885_v9 }
 0x11a   :  { %1465 = vmatprep.subr.mxu0 %v1694_v0  ;;  %1508 = vmatprep.subr.mxu1 %v1694_v0 }
 0x11b   :  { %1466 = vmatpush3.msra.mxu0 %v1821_v51  ;;  %1509 = vmatpush3.msra.mxu1 %v1893_v13 }
 0x11c   :  { %1467 = vmatprep.subr.mxu0 %v1694_v0  ;;  %1510 = vmatprep.subr.mxu1 %v1694_v0 }
 0x11d   :  { %1468 = vmatpush3.msra.mxu0 %v1833_v55  ;;  %1511 = vmatpush3.msra.mxu1 %v1904_v19 }
 0x11e   :  { %1469 = vmatprep.subr.mxu0 %v1694_v0  ;;  %1512 = vmatprep.subr.mxu1 %v1694_v0 }
 0x11f   :  { %1470 = vmatpush3.msra.mxu0 %v1883_v8  ;;  %1513 = vmatpush3.msra.mxu1 %v1916_v28 }
 0x120   :  { %1471 = vmatprep.subr.mxu0 %v1694_v0  ;;  %1514 = vmatprep.subr.mxu1 %v1694_v0 }
 0x121   :  { %1472 = vmatpush3.msra.mxu0 %v1891_v12  ;;  %1515 = vmatpush3.msra.mxu1 %v1923_v44 }
 0x122   :  { %1473 = vmatprep.subr.mxu0 %v1694_v0  ;;  %1516 = vmatprep.subr.mxu1 %v1694_v0 }
 0x123   :  { %1474 = vmatpush3.msra.mxu0 %v1902_v18  ;;  %1517 = vmatpush3.msra.mxu1 %v1936_v57 }
 0x124   :  { %1475 = vmatprep.subr.mxu0 %v1694_v0  ;;  %1518 = vmatprep.subr.mxu1 %v1694_v0 }
 0x125   :  { %1476 = vmatpush3.msra.mxu0 %v1913_v25  ;;  %1519 = vmatpush3.msra.mxu1 %v1946_v2 }
 0x126   :  { %1477 = vmatprep.subr.mxu0 %v1694_v0  ;;  %1521 = vmatmul.mubr.f32.vlgmr.msra.gmra.mxu1 %v640_v39 }
 0x127   :  { %1558 = vmatprep.subr.mxu1 %v1694_v0  ;;  %1478 = vmatpush3.msra.mxu0 %v1927_v48 }
 0x128   :  { %1559 = vmatpush3.msra.mxu1 %v1755_v16  ;;  %1479 = vmatprep.subr.mxu0 %v1694_v0  ;;  %v2158_v16 = vand.u32 4294901760, %v1902_v18 }
 0x129   :  { %1560 = vmatprep.subr.mxu1 %v1694_v0  ;;  %1480 = vmatpush3.msra.mxu0 %v1934_v56 }
 0x12a   :  { %1561 = vmatpush3.msra.mxu1 %v1757_v21  ;;  %1481 = vmatprep.subr.mxu0 %v1694_v0  ;;  %v2159_v21 = vand.u32 4294901760, %v1913_v25 }
 0x12b   :  { %1562 = vmatprep.subr.mxu1 %v1694_v0  ;;  %1482 = vmatpush3.msra.mxu0 %v1944_v1 }
 0x12c   :  { %1563 = vmatpush3.msra.mxu1 %v1762_v27  ;;  %1483 = vmatprep.subr.mxu0 %v1694_v0  ;;  %v2161_v27 = vand.u32 4294901760, %v1934_v56 }
 0x12d   :  { %1564 = vmatprep.subr.mxu1 %v1694_v0  ;;  %1484 = vmatpush3.msra.mxu0 %v1959_v7 }
 0x12e   :  { %1485 = vmatprep.mubr.msk.f32.mxu0 %vm1695_vm0, %v1694_v0  ;;  %1565 = vmatpush3.msra.mxu1 %v1768_v30  ;;  %v2163_v30 = vand.u32 4294901760, %v1959_v7 }
 0x12f   :  { %1486 = vmatmul.mubr.f32.vlgmr.msra.gmra.mxu0 %v1982_v35  ;;  %1523 = vmatprep.subr.mxu0 %v1694_v0 }
 0x130   :  { %1566 = vmatprep.subr.mxu1 %v1694_v0  ;;  %1524 = vmatpush3.msra.mxu0 %v651_v32 }
 0x131   :  { %1567 = vmatpush3.msra.mxu1 %v1776_v34  ;;  %1525 = vmatprep.subr.mxu0 %v1694_v0 }
 0x132   :  { %1568 = vmatprep.subr.mxu1 %v1694_v0  ;;  %1526 = vmatpush3.msra.mxu0 %v658_v36 }
 0x133   :  { %1569 = vmatpush3.msra.mxu1 %v1786_v38  ;;  %1527 = vmatprep.subr.mxu0 %v1694_v0 }
 0x134   :  { %1570 = vmatprep.subr.mxu1 %v1694_v0  ;;  %1528 = vmatpush3.msra.mxu0 %v665_v41 }
 0x135   :  { %1571 = vmatpush3.msra.mxu1 %v1798_v43  ;;  %1529 = vmatprep.subr.mxu0 %v1694_v0  ;;  %v1220_v43 = vld [vmem:[%s2150_s4] ss:$0 sm:$0xff]  ;;  %s1663_s4 = scalar_lea.vmem %s1210_s11, 128 }
 0x136   :  { %1572 = vmatprep.subr.mxu1 %v1694_v0  ;;  %1530 = vmatpush3.msra.mxu0 %v672_v45  ;;  %p1664_p1 = scmp.ne.s32.totalorder %s1210_s11, %s1663_s4  ;;  %p1669_p3 = scmp.lt.s32.totalorder %s1663_s4, %s1663_s4 }
 0x137   :  { %1573 = vmatpush3.msra.mxu1 %v1810_v47  ;;  %1531 = vmatprep.subr.mxu0 %v1694_v0 }
 0x138   :  { %1574 = vmatprep.subr.mxu1 %v1694_v0  ;;  %1532 = vmatpush3.msra.mxu0 %v679_v50  ;;  %p1670_p4 = por %p1669_p3, %p1668_p2 }
 0x139   :  { %1575 = vmatpush3.msra.mxu1 %v1880_v6  ;;  %1533 = vmatprep.subr.mxu0 %v1694_v0 }
 0x13a   :  { %1576 = vmatprep.subr.mxu1 %v1694_v0  ;;  %1534 = vmatpush3.msra.mxu0 %v686_v54  ;;  %p1671_p5 = pnand %p1670_p4, %p1664_p1 }
 0x13b   :  { %1577 = vmatpush3.msra.mxu1 %v1885_v9  ;;  %1535 = vmatprep.subr.mxu0 %v1694_v0 }
 0x13c   :  { %1578 = vmatprep.subr.mxu1 %v1694_v0  ;;  %1536 = vmatpush3.msra.mxu0 %v693_v58 }
 0x13d   :  { %1579 = vmatpush3.msra.mxu1 %v1893_v13  ;;  %1537 = vmatprep.subr.mxu0 %v1694_v0 }
 0x13e   :  { %1580 = vmatprep.subr.mxu1 %v1694_v0  ;;  %1538 = vmatpush3.msra.mxu0 %v700_v61 }
 0x13f   :  { %1581 = vmatpush3.msra.mxu1 %v1904_v19  ;;  %1539 = vmatprep.subr.mxu0 %v1694_v0 }
 0x140   :  { %1582 = vmatprep.subr.mxu1 %v1694_v0  ;;  %1540 = vmatpush3.msra.mxu0 %v707_v11 }
 0x141   :  { %1583 = vmatpush3.msra.mxu1 %v1916_v28  ;;  %1541 = vmatprep.subr.mxu0 %v1694_v0 }
 0x142   :  { %1584 = vmatprep.subr.mxu1 %v1694_v0  ;;  %1542 = vmatpush3.msra.mxu0 %v714_v17 }
 0x143   :  { %1585 = vmatpush3.msra.mxu1 %v1923_v44  ;;  %1543 = vmatprep.subr.mxu0 %v1694_v0 }
 0x144   :  { %1586 = vmatprep.subr.mxu1 %v1694_v0  ;;  %1544 = vmatpush3.msra.mxu0 %v2158_v16 }
 0x145   :  { %1587 = vmatpush3.msra.mxu1 %v1936_v57  ;;  %1545 = vmatprep.subr.mxu0 %v1694_v0 }
 0x146   :  { %1588 = vmatprep.subr.mxu1 %v1694_v0  ;;  %1546 = vmatpush3.msra.mxu0 %v2159_v21 }
 0x147   :  { %1589 = vmatpush3.msra.mxu1 %v1946_v2  ;;  %1590 = vmatprep.mubr.msk.f32.mxu1 %vm1695_vm0, %v1694_v0 }
 0x148   :  { %1547 = vmatprep.subr.mxu0 %v1694_v0  ;;  %1591 = vmatmul.mubr.f32.vlgmr.msra.gmra.mxu1 %v1979_v24 }
 0x149   :  { %1548 = vmatpush3.msra.mxu0 %v2160_v26  ;;  %1555 = vmatprep.mubr.msk.f32.mxu0 %vm1695_vm0, %v1694_v0 }
 0x14a   :  { %1549 = vmatprep.subr.mxu0 %v1694_v0 }
 0x14b   :  { %1550 = vmatpush3.msra.mxu0 %v2161_v27 }
 0x14c   :  { %1551 = vmatprep.subr.mxu0 %v1694_v0 }
 0x14d   :  { %1552 = vmatpush3.msra.mxu0 %v2162_v29 }
 0x14e   :  { %1553 = vmatprep.subr.mxu0 %v1694_v0 }
 0x14f   :  { %1554 = vmatpush3.msra.mxu0 %v2163_v30 }
 0x150   :  { %1556 = vmatmul.mubr.f32.vlgmr.msra.gmra.mxu0 %v1979_v24 }
 0x1c6   :  { %v795_v32 = vpop.f32.mrf.mxu1 }
 0x1c8   :  { %v1452_v33 = vpop.f32.mrf.mxu1 }
 0x1ce   :  { %v644_v34 = vpop.f32.mrf.mxu0 }
 0x1cf   :  { %v645_v45 = vadd.f32 %v1220_v43, %v644_v34 }
 0x1d0   :  { %v1417_v36 = vpop.f32.mrf.mxu0 }
 0x1d1   :  { %v796_v0 = vadd.f32 %v795_v32, %v645_v45 }
 0x1e6   :  { %v988_v37 = vpop.f32.mrf.mxu1 }
 0x1e8   :  { %v1522_v38 = vpop.f32.mrf.mxu1 }
 0x1ef   :  { %v899_v41 = vpop.f32.mrf.mxu0 }
 0x1f0   :  { %v900_v50 = vadd.f32 %v899_v41, %v796_v0 }
 0x1f1   :  { %v1487_v42 = vpop.f32.mrf.mxu0 }
 0x1f2   :  { %v989_v51 = vadd.f32 %v988_v37, %v900_v50 }
 0x208   :  { %v1194_v46 = vpop.f32.mrf.mxu1 }
 0x20a   :  { %v1592_v47 = vpop.f32.mrf.mxu1 }
 0x210   :  { %v1107_v54 = vpop.f32.mrf.mxu0 }
 0x211   :  { %v1108_v55 = vadd.f32 %v1107_v54, %v989_v51 }
 0x212   :  { %v1557_v58 = vpop.f32.mrf.mxu0 }
 0x213   :  { %v1195_v61 = vadd.f32 %v1194_v46, %v1108_v55 }
 0x215   :  { %v1198_v6 = vmul.f32 0.5, %v1195_v61 }
 0x217   :  { %1601 = vtanh.f32 %v1198_v6 }
 0x224   :  { %v1602_v8 = vpop.eup %1601 }
 0x225   :  { %v1200_v9 = vmul.f32 0.5, %v1602_v8 }
 0x227   :  { %v1201_v11 = vadd.f32 0.5, %v1200_v9 }
 0x229   :  { %1202 = vst [vmem:[#allocation8] sm:$0xff] %v1201_v11 }
 0x22a   :  { %1674 = shalt.err (!%p1671_p5)
}
 0x22b   :  { %1212 = dma.vmem_to_hbm [thread:$0]  %s1210_s11, 128, %s2151_s5, [#allocation4]  }
 0x22c   :  { %1687 = dma.done.wait [#allocation4], 128  }
 0x22d   :  { %1688 = vsyncadd [#allocation4], 4294967168 }
 0x22e   :  { %1216 = vsyncpa [#allocation3], 1 }
 0x22f   :  { %1217 = vsyncpa [#allocation6], 1 }
 0x230   :  { %1218 = vsyncpa [#allocation4], 1 }

</bundles_post_ra>
